<compile_context>
chip_gen: v6e
topology: v6e:2x2x1
jax: 0.10.0
libtpu: 0.0.40
codegen_flags: <defaults>
</compile_context>

<pallas_src>
import jax
import jax.numpy as jnp
from jax.experimental import pallas as pl
from jax.experimental.pallas import tpu as pltpu


# --------------------------------------------------------------------------
# Kernels
# --------------------------------------------------------------------------
def _hidden(x_ref, w1_ref, b1_ref, w2_ref, b2_ref):
    """x.float() -> Linear(128) -> ReLU -> Linear(64) -> ReLU, fused in VMEM."""
    x = x_ref[...].astype(jnp.float32)                      # x.float()
    h1 = jnp.dot(x, w1_ref[...], preferred_element_type=jnp.float32) + b1_ref[...]
    h1 = jnp.maximum(h1, 0.0)                               # ReLU
    h2 = jnp.dot(h1, w2_ref[...], preferred_element_type=jnp.float32) + b2_ref[...]
    return jnp.maximum(h2, 0.0)                             # ReLU


def _mlp_kernel_col(x_ref, w1_ref, b1_ref, w2_ref, b2_ref, w3m_ref, b3m_ref, o_ref):
    """Column-output path ((TB, 1) block). Used for small / unaligned batches."""
    h2 = _hidden(x_ref, w1_ref, b1_ref, w2_ref, b2_ref)
    # Folded final layer + mean: mean(h2 @ W3 + b3, 1) == sum(h2 * w3m, 1) + b3m
    o_ref[...] = jnp.sum(h2 * w3m_ref[...], axis=1, keepdims=True) + b3m_ref[0]


def _mlp_kernel_dense(x_ref, w1_ref, b1_ref, w2_ref, b2_ref, w3m_ref, b3m_ref, o_ref):
    """Lane-dense output path.  o_ref block is (1, TB//128, 128)."""
    h2 = _hidden(x_ref, w1_ref, b1_ref, w2_ref, b2_ref)
    # Per-row folded result, one scalar per batch row (lives on sublanes).
    r = jnp.sum(h2 * w3m_ref[...], axis=1, keepdims=True) + b3m_ref[0]   # (TB, 1)

    x_groups = o_ref.shape[1]                # TB // 128
    # Data-movement-free split of the sublane axis (128 is a multiple of 8).
    r3 = r.reshape(x_groups, 128, 1)         # (X, 128, 1)

    # Sublane->lane relayout via diagonal select + sublane reduction:
    #   out[g, l] = sum_s (s == l ? r3[g, s, 0] : 0) = r3[g, l, 0]
    # jnp.where (not multiply) so NaN/Inf garbage in padded ragged rows
    # contributes an exact 0 and cannot poison valid rows of the same group.
    row_id = jax.lax.broadcasted_iota(jnp.int32, (128, 128), 0)
    col_id = jax.lax.broadcasted_iota(jnp.int32, (128, 128), 1)
    eye = (row_id == col_id)[None, :, :]                                  # (1,128,128)
    dense = jnp.sum(jnp.where(eye, r3, 0.0), axis=1)                      # (X, 128)

    o_ref[...] = dense[None, :, :]


# --------------------------------------------------------------------------
# Wrapper
# --------------------------------------------------------------------------
def simple_mlp_forward(x, params, *, block_b=8192,
                       vmem_budget_bytes=36 * 1024 * 1024):
    """x: (B, input_dim) any float dtype. Returns (B,) float32."""
    w1, b1, w2, b2, w3, b3 = params
    B, input_dim = x.shape
    h2_dim = w2.shape[1]

    # Fold final Linear + mean(dim=1) once (exact algebra, no activation after
    # the last layer).
    w3m = jnp.mean(w3.astype(jnp.float32), axis=1).reshape(1, h2_dim)   # (1, 64)
    b3m = jnp.mean(b3.astype(jnp.float32)).reshape(1)                   # (1,)

    vmem = pltpu.MemorySpace.VMEM
    smem = pltpu.MemorySpace.SMEM

    weight_specs = [
        # Constant index_map -> VMEM resident across the whole grid (no re-DMA).
        pl.BlockSpec(w1.shape, lambda i: (0, 0), memory_space=vmem),
        pl.BlockSpec(b1.shape, lambda i: (0, 0), memory_space=vmem),
        pl.BlockSpec(w2.shape, lambda i: (0, 0), memory_space=vmem),
        pl.BlockSpec(b2.shape, lambda i: (0, 0), memory_space=vmem),
        pl.BlockSpec(w3m.shape, lambda i: (0, 0), memory_space=vmem),
        # Folded scalar bias lives in SMEM.
        pl.BlockSpec(memory_space=smem),
    ]
    cparams = pltpu.CompilerParams(
        # Batch tiles are fully independent; "parallel" lets megacore chips
        # shard the grid.  (CORE_PARALLEL deliberately not used so the same
        # code runs unchanged on single-core v5e/v6e.)
        dimension_semantics=("parallel",),
        # 48 MiB is within physical VMEM on v5e/v6e (128 MiB) and v7x (64 MiB).
        vmem_limit_bytes=48 * 1024 * 1024,
    )

    use_dense = (B >= 128) and (block_b >= 128)

    if use_dense:
        # Per-row live bytes: double-buffered x tile (lane-padded to 128),
        # h1 (128 f32), h2 (64 f32), column result, relayout intermediate.
        lanes_pad = ((input_dim + 127) // 128) * 128
        per_row_bytes = 4 * (2 * lanes_pad + 128 + 64 + 128 + 128 + 32)
        tb_cap = max(128, (vmem_budget_bytes // per_row_bytes) // 128 * 128)
        tb = max(128, (min(block_b, tb_cap) // 128) * 128)
        if tb > B:
            tb = (B // 128) * 128        # B >= 128 here, so tb >= 128
        num_tiles = pl.cdiv(B, tb)
        xg = tb // 128

        out = pl.pallas_call(
            _mlp_kernel_dense,
            out_shape=jax.ShapeDtypeStruct((num_tiles, xg, 128), jnp.float32),
            grid=(num_tiles,),
            in_specs=[pl.BlockSpec((tb, input_dim), lambda i: (i, 0),
                                   memory_space=vmem)] + weight_specs,
            out_specs=pl.BlockSpec((1, xg, 128), lambda i: (i, 0, 0),
                                   memory_space=vmem),
            compiler_params=cparams,
        )(x, w1, b1, w2, b2, w3m, b3m)
        # Row-major (tile, group, lane) == batch order; drop padded rows.
        return out.reshape(-1)[:B]

    # -------- small / unaligned fallback: column output --------
    tb = min(block_b, B)
    if tb < B:
        tb = max(8, (tb // 8) * 8)       # sublane-aligned multi-tile path
    out = pl.pallas_call(
        _mlp_kernel_col,
        out_shape=jax.ShapeDtypeStruct((B, 1), jnp.float32),
        grid=(pl.cdiv(B, tb),),
        in_specs=[pl.BlockSpec((tb, input_dim), lambda i: (i, 0),
                               memory_space=vmem)] + weight_specs,
        out_specs=pl.BlockSpec((tb, 1), lambda i: (i, 0), memory_space=vmem),
        compiler_params=cparams,
    )(x, w1, b1, w2, b2, w3m, b3m)
    return out[:, 0]


# --------------------------------------------------------------------------
# Params / reference
# --------------------------------------------------------------------------
def init_params(key, input_dim, output_dim=1):
    """Deterministic init matching nn.Linear shapes (weights stored (in, out))."""
    k1, k2, k3, k4, k5, k6 = jax.random.split(key, 6)

    def lin(kw, kb, fan_in, fan_out):
        bound = 1.0 / jnp.sqrt(fan_in)
        w = jax.random.uniform(kw, (fan_in, fan_out), jnp.float32, -bound, bound)
        b = jax.random.uniform(kb, (1, fan_out), jnp.float32, -bound, bound)
        return w, b

    w1, b1 = lin(k1, k2, input_dim, 128)
    w2, b2 = lin(k3, k4, 128, 64)
    w3, b3 = lin(k5, k6, 64, output_dim)
    return (w1, b1, w2, b2, w3, b3)


def _reference(x, params):
    w1, b1, w2, b2, w3, b3 = params
    xf = x.astype(jnp.float32)
    h1 = jnp.maximum(xf @ w1 + b1, 0.0)
    h2 = jnp.maximum(h1 @ w2 + b2, 0.0)
    return (h2 @ w3 + b3).mean(axis=1)


def _check(x, params, block_b):
    out = simple_mlp_forward(x, params, block_b=block_b)
    jax.block_until_ready(out)
    ref = _reference(x, params)
    assert out.shape == ref.shape, (out.shape, ref.shape)
    err = float(jnp.max(jnp.abs(out - ref)))
    assert jnp.allclose(out, ref, atol=2e-4, rtol=1e-4), f"max |err| = {err}"


# --------------------------------------------------------------------------
# Self-test
# --------------------------------------------------------------------------
if __name__ == "__main__":
    key = jax.random.PRNGKey(0)
    k = jax.random.split(key, 8)

    # Case 1: module defaults (output_dim=1), tiny batch -> column path, 1 tile.
    x1 = jax.random.normal(k[0], (8, 32), dtype=jnp.float32)
    p1 = init_params(k[1], 32, output_dim=1)
    _check(x1, p1, block_b=8192)

    # Case 2: column path, multi-tile with ragged tail, output_dim > 1.
    x2 = jax.random.normal(k[2], (40, 32), dtype=jnp.float32)
    p2 = init_params(k[3], 32, output_dim=4)
    _check(x2, p2, block_b=16)          # grid = (3,), tail of 8 rows

    # Case 3: lane-dense path, 3 full 128-row tiles (X = 1 per tile).
    x3 = jax.random.normal(k[4], (384, 32), dtype=jnp.float32)
    p3 = init_params(k[5], 32, output_dim=1)
    _check(x3, p3, block_b=128)

    # Case 4: lane-dense path, TB=256 (X = 2), ragged last tile (44 valid rows)
    # -> exercises the NaN-safe where-masked relayout with garbage rows.
    x4 = jax.random.normal(k[6], (300, 32), dtype=jnp.float32)
    p4 = init_params(k[7], 32, output_dim=3)
    _check(x4, p4, block_b=256)

    print("KERNEL_OK")
</pallas_src>

<mosaic_0001>
module attributes {stable_mosaic.version = 11 : i64} {
  func.func @_mlp_kernel_col(%arg0: i32, %arg1: memref<8x32xf32, #tpu.memory_space<vmem>>, %arg2: memref<32x128xf32, #tpu.memory_space<vmem>>, %arg3: memref<1x128xf32, #tpu.memory_space<vmem>>, %arg4: memref<128x64xf32, #tpu.memory_space<vmem>>, %arg5: memref<1x64xf32, #tpu.memory_space<vmem>>, %arg6: memref<1x64xf32, #tpu.memory_space<vmem>>, %arg7: memref<1xf32, #tpu.memory_space<smem>>, %arg8: memref<8x1xf32, #tpu.memory_space<vmem>>) attributes {dimension_semantics = [#tpu.dimension_semantics<parallel>], iteration_bounds = array<i64: 1>, scalar_prefetch = 0 : i64, scratch_operands = 0 : i64, tpu.core_type = #tpu.core_type<tc>, window_params = [{transform_indices = @transform_0, window_bounds = array<i64: 8, 32>}, {pipeline_mode = #tpu.pipeline_mode<synchronous>, transform_indices = @transform_1, window_bounds = array<i64: 32, 128>}, {pipeline_mode = #tpu.pipeline_mode<synchronous>, transform_indices = @transform_2, window_bounds = array<i64: 1, 128>}, {pipeline_mode = #tpu.pipeline_mode<synchronous>, transform_indices = @transform_3, window_bounds = array<i64: 128, 64>}, {pipeline_mode = #tpu.pipeline_mode<synchronous>, transform_indices = @transform_4, window_bounds = array<i64: 1, 64>}, {pipeline_mode = #tpu.pipeline_mode<synchronous>, transform_indices = @transform_5, window_bounds = array<i64: 1, 64>}, {transform_indices = @transform_6, window_bounds = array<i64: 1>}, {transform_indices = @transform_7, window_bounds = array<i64: 8, 1>}]} {
    %c0 = arith.constant 0 : index
    %c0_0 = arith.constant 0 : index
    %0 = vector.load %arg1[%c0, %c0_0] : memref<8x32xf32, #tpu.memory_space<vmem>>, vector<8x32xf32>
    %c0_1 = arith.constant 0 : index
    %c0_2 = arith.constant 0 : index
    %1 = vector.load %arg2[%c0_1, %c0_2] : memref<32x128xf32, #tpu.memory_space<vmem>>, vector<32x128xf32>
    %cst = arith.constant dense<0.000000e+00> : vector<8x128xf32>
    %2 = tpu.matmul %0, %1, %cst {dimension_numbers = #tpu.dot_dimension_numbers<[1], [0], [0], [1], [0, 0, 1, 1], [], []>} : vector<8x32xf32>, vector<32x128xf32>, vector<8x128xf32> -> vector<8x128xf32>
    %c0_3 = arith.constant 0 : index
    %c0_4 = arith.constant 0 : index
    %3 = vector.load %arg3[%c0_3, %c0_4] : memref<1x128xf32, #tpu.memory_space<vmem>>, vector<1x128xf32>
    %4 = vector.broadcast %3 : vector<1x128xf32> to vector<8x128xf32>
    %5 = arith.addf %2, %4 : vector<8x128xf32>
    %cst_5 = arith.constant 0.000000e+00 : f32
    %6 = vector.broadcast %cst_5 : f32 to vector<8x128xf32>
    %7 = arith.maximumf %5, %6 : vector<8x128xf32>
    %c0_6 = arith.constant 0 : index
    %c0_7 = arith.constant 0 : index
    %8 = vector.load %arg4[%c0_6, %c0_7] : memref<128x64xf32, #tpu.memory_space<vmem>>, vector<128x64xf32>
    %cst_8 = arith.constant dense<0.000000e+00> : vector<8x64xf32>
    %9 = tpu.matmul %7, %8, %cst_8 {dimension_numbers = #tpu.dot_dimension_numbers<[1], [0], [0], [1], [0, 0, 1, 1], [], []>} : vector<8x128xf32>, vector<128x64xf32>, vector<8x64xf32> -> vector<8x64xf32>
    %c0_9 = arith.constant 0 : index
    %c0_10 = arith.constant 0 : index
    %10 = vector.load %arg5[%c0_9, %c0_10] : memref<1x64xf32, #tpu.memory_space<vmem>>, vector<1x64xf32>
    %11 = vector.broadcast %10 : vector<1x64xf32> to vector<8x64xf32>
    %12 = arith.addf %9, %11 : vector<8x64xf32>
    %cst_11 = arith.constant 0.000000e+00 : f32
    %13 = vector.broadcast %cst_11 : f32 to vector<8x64xf32>
    %14 = arith.maximumf %12, %13 : vector<8x64xf32>
    %c0_12 = arith.constant 0 : index
    %c0_13 = arith.constant 0 : index
    %15 = vector.load %arg6[%c0_12, %c0_13] : memref<1x64xf32, #tpu.memory_space<vmem>>, vector<1x64xf32>
    %16 = vector.broadcast %15 : vector<1x64xf32> to vector<8x64xf32>
    %17 = arith.mulf %14, %16 : vector<8x64xf32>
    %cst_14 = arith.constant dense<0.000000e+00> : vector<8xf32>
    %18 = vector.multi_reduction <add>, %17, %cst_14 [1] : vector<8x64xf32> to vector<8xf32>
    %19 = vector.shape_cast %18 : vector<8xf32> to vector<8x1xf32>
    %c0_15 = arith.constant 0 : index
    %20 = memref.load %arg7[%c0_15] : memref<1xf32, #tpu.memory_space<smem>>
    %21 = vector.broadcast %20 : f32 to vector<8x1xf32>
    %22 = arith.addf %19, %21 : vector<8x1xf32>
    %c0_16 = arith.constant 0 : index
    %c0_17 = arith.constant 0 : index
    %23 = vector.load %arg8[%c0_16, %c0_17] : memref<8x1xf32, #tpu.memory_space<vmem>>, vector<8x1xf32>
    tpu.vector_store %arg8[%c0_16, %c0_17], %22 {strides = array<i32>} : memref<8x1xf32, #tpu.memory_space<vmem>>, vector<8x1xf32>,
    return
  }
  func.func @transform_0(%arg0: i32) -> (i32, i32) {
    %c0_i32 = arith.constant 0 : i32
    %c0_i32_0 = arith.constant 0 : i32
    return %arg0, %c0_i32 : i32, i32
  }
  func.func @transform_1(%arg0: i32) -> (i32, i32) {
    %c0_i32 = arith.constant 0 : i32
    %c0_i32_0 = arith.constant 0 : i32
    %c0_i32_1 = arith.constant 0 : i32
    return %c0_i32, %c0_i32_0 : i32, i32
  }
  func.func @transform_2(%arg0: i32) -> (i32, i32) {
    %c0_i32 = arith.constant 0 : i32
    %c0_i32_0 = arith.constant 0 : i32
    %c0_i32_1 = arith.constant 0 : i32
    return %c0_i32, %c0_i32_0 : i32, i32
  }
  func.func @transform_3(%arg0: i32) -> (i32, i32) {
    %c0_i32 = arith.constant 0 : i32
    %c0_i32_0 = arith.constant 0 : i32
    %c0_i32_1 = arith.constant 0 : i32
    return %c0_i32, %c0_i32_0 : i32, i32
  }
  func.func @transform_4(%arg0: i32) -> (i32, i32) {
    %c0_i32 = arith.constant 0 : i32
    %c0_i32_0 = arith.constant 0 : i32
    %c0_i32_1 = arith.constant 0 : i32
    return %c0_i32, %c0_i32_0 : i32, i32
  }
  func.func @transform_5(%arg0: i32) -> (i32, i32) {
    %c0_i32 = arith.constant 0 : i32
    %c0_i32_0 = arith.constant 0 : i32
    %c0_i32_1 = arith.constant 0 : i32
    return %c0_i32, %c0_i32_0 : i32, i32
  }
  func.func @transform_6(%arg0: i32) -> i32 {
    %c0_i32 = arith.constant 0 : i32
    %c0_i32_0 = arith.constant 0 : i32
    return %c0_i32 : i32
  }
  func.func @transform_7(%arg0: i32) -> (i32, i32) {
    %c0_i32 = arith.constant 0 : i32
    %c0_i32_0 = arith.constant 0 : i32
    return %arg0, %c0_i32 : i32, i32
  }
}

</mosaic_0001>

<bundles_post_ra>
// kernel: tpu_custom_call.1
= control target key start
LH: loop header
LB: loop body
LE: loop exit
PB: predicated region body
PF: predicated region fallthrough
CT: control target
= control target key end

     0   :  { %v303_v0 = vmov 0.0   ;;  %vm304_vm0 = vmmov 0   ;;  %vm39_vm1 = vcmask 261120   ;;  %vm216_vm2 = vcmask 523264   ;;  %s447_s1 = inlined_call_operand.vmem [shape: f32[32,128], index: 1, kind: input, shape index: {}]   ;;  %s448_s3 = inlined_call_operand.vmem [shape: f32[128,64], index: 3, kind: input, shape index: {}]   ;;  %s449_s0 = inlined_call_operand.vmem [shape: f32[8,32], index: 0, kind: input, shape index: {}]   ;;  %s450_s2 = inlined_call_operand.vmem [shape: f32[1,128], index: 2, kind: input, shape index: {}]   ;;  %s451_s4 = inlined_call_operand.vmem [shape: f32[1,64], index: 4, kind: input, shape index: {}]   ;;  %s452_s5 = inlined_call_operand.vmem [shape: f32[1,64], index: 5, kind: input, shape index: {}]   ;;  %s453_s6 = inlined_call_operand.<no memory space> [shape: f32[1], index: 6, kind: input, shape index: {}]   ;;  %s454_s7 = inlined_call_operand.vmem [shape: f32[8,1], index: 7, kind: output, shape index: {}]  }
   0x1   :  { %255 = vmatprep.subr.mxu0 %v303_v0  ;;  %v31_v1 = vld [vmem:[%s447_s1 + $0x18] sm:$0xff]  ;;  %v30_v2 = vld [vmem:[%s447_s1 + $0x10] sm:$0xff]  ;;  %263 = vmatprep.mubr.msk.f32.mxu0 %vm304_vm0, %v303_v0  ;;  %v29_v4 = vld [vmem:[%s447_s1 + $0x8] sm:$0xff]  ;;  %v221_v35 = vstv %s453_s6  ;;  %vm223_vm3 = vcmask 7168  }
   0x2   :  { %256 = vmatpush3.msra.mxu0 %v31_v1  ;;  %266 = vmatprep.subr.mxu1 %v303_v0  ;;  %v129_v3 = vld [vmem:[%s448_s3 + $0x78] sm:$0xff]  ;;  %v128_v5 = vld [vmem:[%s448_s3 + $0x70] sm:$0xff]  ;;  %v127_v6 = vld [vmem:[%s448_s3 + $0x68] sm:$0xff] }
   0x3   :  { %257 = vmatprep.subr.mxu0 %v303_v0  ;;  %267 = vmatpush3.msra.mxu1 %v129_v3  ;;  %v28_v7 = vld [vmem:[%s447_s1] sm:$0xff]  ;;  %v125_v10 = vld [vmem:[%s448_s3 + $0x58] sm:$0xff]  ;;  %v124_v11 = vld [vmem:[%s448_s3 + $0x50] sm:$0xff] }
   0x4   :  { %258 = vmatpush3.msra.mxu0 %v30_v2  ;;  %268 = vmatprep.subr.mxu1 %v303_v0  ;;  %v27_v8 = vld [vmem:[%s449_s0] sm:$0xff]  ;;  %v123_v12 = vld [vmem:[%s448_s3 + $0x48] sm:$0xff]  ;;  %v121_v14 = vld [vmem:[%s448_s3 + $0x38] sm:$0xff] }
   0x5   :  { %259 = vmatprep.subr.mxu0 %v303_v0  ;;  %269 = vmatpush3.msra.mxu1 %v128_v5  ;;  %v126_v9 = vld [vmem:[%s448_s3 + $0x60] sm:$0xff]  ;;  %v120_v15 = vld [vmem:[%s448_s3 + $0x30] sm:$0xff]  ;;  %v119_v16 = vld [vmem:[%s448_s3 + $0x28] sm:$0xff] }
   0x6   :  { %260 = vmatpush3.msra.mxu0 %v29_v4  ;;  %270 = vmatprep.subr.mxu1 %v303_v0  ;;  %v122_v13 = vld [vmem:[%s448_s3 + $0x40] sm:$0xff]  ;;  %v117_v18 = vld [vmem:[%s448_s3 + $0x18] sm:$0xff]  ;;  %v116_v19 = vld [vmem:[%s448_s3 + $0x10] sm:$0xff] }
   0x7   :  { %261 = vmatprep.subr.mxu0 %v303_v0  ;;  %271 = vmatpush3.msra.mxu1 %v127_v6  ;;  %v118_v17 = vld [vmem:[%s448_s3 + $0x20] sm:$0xff]  ;;  %v115_v20 = vld [vmem:[%s448_s3 + $0x8] sm:$0xff] }
   0x8   :  { %262 = vmatpush3.msra.mxu0 %v28_v7  ;;  %272 = vmatprep.subr.mxu1 %v303_v0  ;;  %v114_v21 = vld [vmem:[%s448_s3] sm:$0xff] }
   0x9   :  { %264 = vmatmul.mubr.msk.f32.vlgmr.msra.gmra.mxu0 %vm39_vm1, %v27_v8  ;;  %273 = vmatpush3.msra.mxu1 %v126_v9  ;;  %v229_v22 = vld [vmem:[%s450_s2] ss:$0 sm:$0xff] }
   0xa   :  { %274 = vmatprep.subr.mxu1 %v303_v0  ;;  %298 = vmatprep.mubr.msk.f32.mxu1 %vm304_vm0, %v303_v0  ;;  %v231_v27 = vld [vmem:[%s451_s4] ss:$0 sm:$0xff] }
   0xb   :  { %275 = vmatpush3.msra.mxu1 %v125_v10  ;;  %v232_v31 = vld [vmem:[%s452_s5] ss:$0 sm:$0xff] }
   0xc   :  { %276 = vmatprep.subr.mxu1 %v303_v0 }
   0xd   :  { %277 = vmatpush3.msra.mxu1 %v124_v11 }
   0xe   :  { %278 = vmatprep.subr.mxu1 %v303_v0 }
   0xf   :  { %279 = vmatpush3.msra.mxu1 %v123_v12 }
  0x10   :  { %280 = vmatprep.subr.mxu1 %v303_v0 }
  0x11   :  { %281 = vmatpush3.msra.mxu1 %v122_v13 }
  0x12   :  { %282 = vmatprep.subr.mxu1 %v303_v0 }
  0x13   :  { %283 = vmatpush3.msra.mxu1 %v121_v14 }
  0x14   :  { %284 = vmatprep.subr.mxu1 %v303_v0 }
  0x15   :  { %285 = vmatpush3.msra.mxu1 %v120_v15 }
  0x16   :  { %286 = vmatprep.subr.mxu1 %v303_v0 }
  0x17   :  { %287 = vmatpush3.msra.mxu1 %v119_v16 }
  0x18   :  { %288 = vmatprep.subr.mxu1 %v303_v0 }
  0x19   :  { %289 = vmatpush3.msra.mxu1 %v118_v17 }
  0x1a   :  { %290 = vmatprep.subr.mxu1 %v303_v0 }
  0x1b   :  { %291 = vmatpush3.msra.mxu1 %v117_v18 }
  0x1c   :  { %292 = vmatprep.subr.mxu1 %v303_v0 }
  0x1d   :  { %293 = vmatpush3.msra.mxu1 %v116_v19 }
  0x1e   :  { %294 = vmatprep.subr.mxu1 %v303_v0 }
  0x1f   :  { %295 = vmatpush3.msra.mxu1 %v115_v20 }
  0x20   :  { %296 = vmatprep.subr.mxu1 %v303_v0 }
  0x21   :  { %297 = vmatpush3.msra.mxu1 %v114_v21 }
  0xc9   :  { %v109_v23 = vpop.f32.mrf.mxu0 }
  0xca   :  { %v110_v24 = vadd.f32 %v229_v22, %v109_v23 }
  0xcb   :  { %v265_v25 = vpop.f32.mrf.mxu0 }
  0xcc   :  { %v113_v26 = vmax.f32 %v110_v24, 0.0 }
  0xce   :  { %299 = vmatmul.mubr.f32.vlgmr.msra.gmra.mxu1 %v113_v26 }
 0x18e   :  { %v203_v28 = vpop.f32.mrf.mxu1 }
 0x18f   :  { %v204_v29 = vadd.f32 %v231_v27, %v203_v28 }
 0x190   :  { %v300_v30 = vpop.f32.mrf.mxu1 }
 0x191   :  { %v207_v32 = vmax.f32 %v204_v29, 0.0 }
 0x193   :  { %v215_v33 = vmul.f32 %v232_v31, %v207_v32 }
 0x195   :  { %v217_v34 = vsel %vm216_vm2, %v215_v33, 0.0 }
 0x196   :  { %218 = vadd.xlane.f32.xlu0 %v217_v34 }
 0x21f   :  { %v219_v36 = vpop.xlane.xlu0 %218 }
 0x220   :  { %v222_v37 = vadd.f32 %v221_v35, %v219_v36 }
 0x222   :  { %224 = vst.msk [vmem:[%s454_s7] sm:$0xff] %vm223_vm3, %v222_v37 }

</bundles_post_ra>
